<compile_context>
chip_gen: v7x
topology: tpu7x:2x2x1
jax: 0.10.0
libtpu: 0.0.40
codegen_flags: <defaults>
</compile_context>

<pallas_src>
import functools

import jax
import jax.numpy as jnp
from jax import lax
from jax.experimental import pallas as pl
from jax.experimental.pallas import tpu as pltpu

EPS = 1e-6


def _layernorm_kernel(has_bias, true_d, *refs):
    """Row-wise LayerNorm over the last axis of a (tm, Dp) tile.

    true_d is the unpadded feature size; Dp (= x_ref.shape[-1]) may be lane-padded
    to a multiple of 128 (padded lanes of x / weight / bias are zero).
    """
    if has_bias:
        x_ref, w_ref, b_ref, o_ref = refs
    else:
        x_ref, w_ref, o_ref = refs
        b_ref = None

    x = x_ref[...].astype(jnp.float32)           # (tm, Dp); no-op cast for f32 inputs
    d_pad = x.shape[-1]
    inv_d = jnp.float32(1.0 / true_d)

    # Two-pass statistics. Padded lanes are zero, so the plain sum already equals the
    # sum over the true lanes.
    mean = jnp.sum(x, axis=-1, keepdims=True) * inv_d
    xc = x - mean
    if d_pad != true_d:
        lane = lax.broadcasted_iota(jnp.int32, (1, d_pad), 1)
        xc_stat = jnp.where(lane < true_d, xc, 0.0)   # mask pad lanes out of variance
    else:
        xc_stat = xc
    var = jnp.sum(xc_stat * xc_stat, axis=-1, keepdims=True) * inv_d
    inv = lax.rsqrt(var + jnp.float32(EPS))           # EUP

    y = xc * inv
    y = y * w_ref[...].astype(jnp.float32)
    if b_ref is not None:
        y = y + b_ref[...].astype(jnp.float32)
    o_ref[...] = y.astype(o_ref.dtype)


def _vmem_capacity_bytes():
    """Physical VMEM per TensorCore (128 MiB v5e/v6e, 64 MiB v7x); safe fallback."""
    try:
        info = pltpu.get_tpu_info()
        for attr in ("vmem_capacity_bytes", "vmem_size_bytes", "vmem_bytes"):
            v = getattr(info, attr, None)
            if v:
                return int(v)
    except Exception:
        pass
    return 64 << 20  # conservative (v7x-sized) fallback


def _num_tensorcores(vmem_phys):
    try:
        info = pltpu.get_tpu_info()
        for attr in ("num_cores", "num_tensorcores", "tensorcore_count", "core_count"):
            v = getattr(info, attr, None)
            if v:
                return int(v)
    except Exception:
        pass
    # Heuristic: 64 MiB-VMEM parts (v7x) have 2 TensorCores per chip.
    return 2 if vmem_phys <= (64 << 20) else 1


def _pick_row_tile(n_rows, d_pad, itemsize, vmem_cap, target_in_bytes, num_cores):
    """Row tile: as big as the per-generation VMEM budget allows, multiple of 8."""
    row_in_bytes = d_pad * itemsize
    # Per tile row VMEM cost: double-buffered input + output blocks, plus the live
    # f32 temporaries created in-kernel (only extra copies when the input is < 32-bit).
    f32_temp_copies = 2 if itemsize < 4 else 1
    per_row = 4 * row_in_bytes + f32_temp_copies * d_pad * 4
    budget = max(vmem_cap - (2 << 20), 4 << 20)       # headroom for weight/bias/etc.
    tm_vmem = budget // per_row

    tm_target = max(target_in_bytes // max(row_in_bytes, 1), 8)
    tm = int(min(tm_vmem, tm_target))
    tm = max(8, (tm // 8) * 8)
    if tm >= n_rows:
        tm = n_rows   # full-extent block dim is always legal

    # Megacore balance (multi-TC parts only): the row axis is "parallel" and gets
    # sharded across TensorCores; keep an even step count >= 2 so neither core idles.
    # Never shrink tiles on single-TC v5e/v6e.
    if num_cores > 1 and n_rows >= 16:
        steps = -(-n_rows // tm)
        if steps < 2 or steps % 2 == 1:
            steps = max(2, steps + (steps % 2))
            tm = -(-n_rows // steps)
            tm = max(8, ((tm + 7) // 8) * 8)
            if tm > n_rows:
                tm = n_rows
    return tm


def layer_norm(x, weight, bias=None):
    """LayerNorm over the last axis of x, matching F.layer_norm(..., eps=1e-6)."""
    dim = x.shape[-1]
    assert weight.shape == (dim,)
    if bias is not None:
        assert bias.shape == (dim,)

    orig_shape = x.shape
    n_rows = 1
    for s in orig_shape[:-1]:
        n_rows *= s

    # Lane padding: keep the feature axis a multiple of 128 so in-kernel output stores
    # are lane-dense vst (not vst.msk). Trades one wrapper-side pad/slice for unmasked
    # stores inside the memory-bound kernel.
    d_pad = ((dim + 127) // 128) * 128 if dim % 128 else dim

    x2 = x.reshape(n_rows, dim)
    w2 = weight.reshape(1, dim)
    b2 = bias.reshape(1, dim) if bias is not None else None
    if d_pad != dim:
        x2 = jnp.pad(x2, ((0, 0), (0, d_pad - dim)))
        w2 = jnp.pad(w2, ((0, 0), (0, d_pad - dim)))
        if b2 is not None:
            b2 = jnp.pad(b2, ((0, 0), (0, d_pad - dim)))

    itemsize = jnp.dtype(x.dtype).itemsize
    vmem_phys = _vmem_capacity_bytes()
    num_cores = _num_tensorcores(vmem_phys)
    # Scoped VMEM: 3/4 of physical (48 MiB on v7x, 96 MiB on v5e/v6e).
    vmem_cap = int(min((vmem_phys * 3) // 4, 100 << 20))
    # Input-block target per generation; bigger blocks amortize ~0.35 us/grid-step.
    target_in = (4 << 20) if vmem_phys <= (64 << 20) else (8 << 20)

    tm = _pick_row_tile(n_rows, d_pad, itemsize, vmem_cap, target_in, num_cores)
    grid = (pl.cdiv(n_rows, tm),)

    has_bias = bias is not None
    in_specs = [
        pl.BlockSpec((tm, d_pad), lambda i: (i, 0)),
        pl.BlockSpec((1, d_pad), lambda i: (0, 0)),   # weight: resident across steps
    ]
    operands = [x2, w2]
    if has_bias:
        in_specs.append(pl.BlockSpec((1, d_pad), lambda i: (0, 0)))
        operands.append(b2)

    out = pl.pallas_call(
        functools.partial(_layernorm_kernel, has_bias, dim),
        out_shape=jax.ShapeDtypeStruct((n_rows, d_pad), x.dtype),
        grid_spec=pltpu.PrefetchScalarGridSpec(
            num_scalar_prefetch=0,
            grid=grid,
            in_specs=in_specs,
            out_specs=pl.BlockSpec((tm, d_pad), lambda i: (i, 0)),
        ),
        compiler_params=pltpu.CompilerParams(
            dimension_semantics=("parallel",),
            vmem_limit_bytes=vmem_cap,
        ),
    )(*operands)

    if d_pad != dim:
        out = out[:, :dim]
    return out.reshape(orig_shape)


def _ref_layer_norm(x, weight, bias=None):
    x32 = x.astype(jnp.float32)
    mean = jnp.mean(x32, axis=-1, keepdims=True)
    var = jnp.mean((x32 - mean) ** 2, axis=-1, keepdims=True)
    y = (x32 - mean) / jnp.sqrt(var + EPS) * weight.astype(jnp.float32)
    if bias is not None:
        y = y + bias.astype(jnp.float32)
    return y.astype(x.dtype)


if __name__ == "__main__":
    key = jax.random.PRNGKey(0)
    k0, k1, k2, k3, k4, k5 = jax.random.split(key, 6)

    # Test 1: module defaults (weight=ones, bias=None), lane-aligned shape.
    B, S, D = 2, 8, 128
    x = jax.random.normal(k0, (B, S, D), dtype=jnp.float32)
    weight = jnp.ones((D,), dtype=jnp.float32)
    y = jax.block_until_ready(layer_norm(x, weight, None))
    assert jnp.allclose(y, _ref_layer_norm(x, weight, None), atol=1e-4, rtol=1e-4)

    # Test 2: bias enabled, row count may not divide the tile (partial last block).
    D2 = 128
    x2 = jax.random.normal(k1, (4, 25, D2), dtype=jnp.float32)  # 100 rows
    w2 = 1.0 + 0.1 * jax.random.normal(k2, (D2,), dtype=jnp.float32)
    b2 = 0.1 * jax.random.normal(k3, (D2,), dtype=jnp.float32)
    y2 = jax.block_until_ready(layer_norm(x2, w2, b2))
    assert jnp.allclose(y2, _ref_layer_norm(x2, w2, b2), atol=1e-4, rtol=1e-4)

    # Test 3: feature dim not a multiple of 128 (lane padding + masked variance),
    # with a nonzero mean to exercise the two-pass statistics.
    D3 = 100
    x3 = jax.random.normal(k4, (2, 12, D3), dtype=jnp.float32) + 3.0
    w3 = 1.0 + 0.1 * jax.random.normal(k5, (D3,), dtype=jnp.float32)
    y3 = jax.block_until_ready(layer_norm(x3, w3, None))
    assert jnp.allclose(y3, _ref_layer_norm(x3, w3, None), atol=1e-4, rtol=1e-4)

    # Test 4: bf16 input (f32 math inside, bf16 output).
    x4 = jax.random.normal(k0, (2, 16, 256), dtype=jnp.bfloat16)
    w4 = jnp.ones((256,), dtype=jnp.bfloat16)
    y4 = jax.block_until_ready(layer_norm(x4, w4, None))
    assert jnp.allclose(
        y4.astype(jnp.float32),
        _ref_layer_norm(x4, w4, None).astype(jnp.float32),
        atol=3e-2, rtol=3e-2)

    print("KERNEL_OK")
</pallas_src>

<mosaic_0001>
module attributes {stable_mosaic.version = 11 : i64} {
  func.func @_layernorm_kernel(%arg0: i32, %arg1: memref<8x128xf32, #tpu.memory_space<vmem>>, %arg2: memref<1x128xf32, #tpu.memory_space<vmem>>, %arg3: memref<8x128xf32, #tpu.memory_space<vmem>>) attributes {dimension_semantics = [#tpu.dimension_semantics<parallel>], iteration_bounds = array<i64: 2>, scalar_prefetch = 0 : i64, scratch_operands = 0 : i64, tpu.core_type = #tpu.core_type<tc>, window_params = [{transform_indices = @transform_0, window_bounds = array<i64: 8, 128>}, {pipeline_mode = #tpu.pipeline_mode<synchronous>, transform_indices = @transform_1, window_bounds = array<i64: 1, 128>}, {transform_indices = @transform_2, window_bounds = array<i64: 8, 128>}]} {
    %c0 = arith.constant 0 : index
    %c0_0 = arith.constant 0 : index
    %0 = vector.load %arg1[%c0, %c0_0] : memref<8x128xf32, #tpu.memory_space<vmem>>, vector<8x128xf32>
    %cst = arith.constant dense<0.000000e+00> : vector<8xf32>
    %1 = vector.multi_reduction <add>, %0, %cst [1] : vector<8x128xf32> to vector<8xf32>
    %2 = vector.shape_cast %1 : vector<8xf32> to vector<8x1xf32>
    %cst_1 = arith.constant 7.812500e-03 : f32
    %3 = vector.broadcast %cst_1 : f32 to vector<8x1xf32>
    %4 = arith.mulf %2, %3 : vector<8x1xf32>
    %5 = vector.broadcast %4 : vector<8x1xf32> to vector<8x128xf32>
    %6 = arith.subf %0, %5 : vector<8x128xf32>
    %7 = arith.mulf %6, %6 : vector<8x128xf32>
    %cst_2 = arith.constant dense<0.000000e+00> : vector<8xf32>
    %8 = vector.multi_reduction <add>, %7, %cst_2 [1] : vector<8x128xf32> to vector<8xf32>
    %9 = vector.shape_cast %8 : vector<8xf32> to vector<8x1xf32>
    %cst_3 = arith.constant 7.812500e-03 : f32
    %10 = vector.broadcast %cst_3 : f32 to vector<8x1xf32>
    %11 = arith.mulf %9, %10 : vector<8x1xf32>
    %cst_4 = arith.constant 9.99999997E-7 : f32
    %12 = vector.broadcast %cst_4 : f32 to vector<8x1xf32>
    %13 = arith.addf %11, %12 : vector<8x1xf32>
    %14 = math.rsqrt %13 : vector<8x1xf32>
    %15 = vector.broadcast %14 : vector<8x1xf32> to vector<8x128xf32>
    %16 = arith.mulf %6, %15 : vector<8x128xf32>
    %c0_5 = arith.constant 0 : index
    %c0_6 = arith.constant 0 : index
    %17 = vector.load %arg2[%c0_5, %c0_6] : memref<1x128xf32, #tpu.memory_space<vmem>>, vector<1x128xf32>
    %18 = vector.broadcast %17 : vector<1x128xf32> to vector<8x128xf32>
    %19 = arith.mulf %16, %18 : vector<8x128xf32>
    %c0_7 = arith.constant 0 : index
    %c0_8 = arith.constant 0 : index
    %20 = vector.load %arg3[%c0_7, %c0_8] : memref<8x128xf32, #tpu.memory_space<vmem>>, vector<8x128xf32>
    tpu.vector_store %arg3[%c0_7, %c0_8], %19 {strides = array<i32>} : memref<8x128xf32, #tpu.memory_space<vmem>>, vector<8x128xf32>,
    return
  }
  func.func @transform_0(%arg0: i32) -> (i32, i32) {
    %c0_i32 = arith.constant 0 : i32
    %c0_i32_0 = arith.constant 0 : i32
    return %arg0, %c0_i32 : i32, i32
  }
  func.func @transform_1(%arg0: i32) -> (i32, i32) {
    %c0_i32 = arith.constant 0 : i32
    %c0_i32_0 = arith.constant 0 : i32
    %c0_i32_1 = arith.constant 0 : i32
    return %c0_i32, %c0_i32_0 : i32, i32
  }
  func.func @transform_2(%arg0: i32) -> (i32, i32) {
    %c0_i32 = arith.constant 0 : i32
    %c0_i32_0 = arith.constant 0 : i32
    return %arg0, %c0_i32 : i32, i32
  }
}

</mosaic_0001>

<bundles_post_ra>
// kernel: tpu_custom_call.1
= control target key start
LH: loop header
LB: loop body
LE: loop exit
PB: predicated region body
PF: predicated region fallthrough
CT: control target
= control target key end

     0   :  { %7 = vsyncpa [#allocation3], 0  ;;  %s604_s0 = inlined_call_operand.hbm [shape: f32[16,128], index: 0, kind: input, shape index: {}]   ;;  %s605_s1 = inlined_call_operand.vmem [shape: f32[1,128], index: 1, kind: input, shape index: {}]   ;;  %s606_s2 = inlined_call_operand.hbm [shape: f32[16,128], index: 2, kind: output, shape index: {}]  }
   0x1   :  { %9 = vsyncpa [#allocation3 + $0x1], 0 }
   0x2   :  { %10 = vsyncpa [#allocation4], 0 }
   0x3   :  { %12 = vsyncpa [#allocation4 + $0x1], 0  ;;  %s440_s9 = smov 0   ;;  %s442_s10 = smov 0  }
   0x4   :  { %s444_s11 = smov 0   ;;  %s446_s12 = smov 0  }
   0x5 LB: > { %s461_s13 = sadd.s32 4294967295, %s421_s12   ;;  %s264_s14 = sadd.s32 4294967294, %s421_s12   ;;  %s421_s12 = sphi %s446_s12, %s621_s12   ;;  %s417_s11 = sphi %s444_s11, %s620_s11   ;;  %s413_s10 = sphi %s442_s10, %s619_s10   ;;  %s409_s9 = sphi %s440_s9, %s618_s9  }
   0x6   : > { %s465_s15 = sadd.s32 1, %s421_s12   ;;  %s25_s16 = sadd.s32 1, %s417_s11 }
   0x7   : > { %s22_s17 = ssub.s32 %s421_s12, %s465_s15  ;;  %p32_p0 = scmp.ne.s32.totalorder %s417_s11, %s413_s10 }
   0x8   : > { %p23_p1 = scmp.eq.s32.totalorder %s22_s17, 0  ;;  %p33_p2 = scmp.eq.s32.totalorder %s421_s12, 0 }
   0x9   : > { %p38_p3 = scmp.ne.s32.totalorder %s413_s10, %s409_s9  ;;  %p39_p4 = scmp.eq.s32.totalorder %s461_s13, 0 }
   0xa   : > { %s477_s18 = scalar_select %p23_p1, %s417_s11, %s25_s16  }
   0xb   : > { %p479_p5 = por %p33_p2, %p32_p0  ;;  %p483_p6 = por %p39_p4, %p38_p3 }
   0xc   : > { %p83_p7 = scmp.eq.s32.totalorder %s461_s13, 1  ;;  %p89_p8 = scmp.eq.s32.totalorder %s264_s14, 1 }
   0xd   : > { %p289_p10 = scmp.lt.s32.totalorder %s421_s12, 2  ;;  %s112_s23 = sand.u32 1, %s417_s11  }
   0xe   : > { %p490_p11 = por %p83_p7, %p32_p0  ;;  %p494_p12 = por %p89_p8, %p38_p3 }
   0xf   : > { %s268_s24 = sshll.u32 %s421_s12, 7  ;;  %s267_s25 = sshll.u32 %s112_s23, 3 }
  0x10   : > { %s610_s21 = scalar_select %p490_p11, 1, 0 }
  0x11   : > { %s611_s22 = scalar_select %p494_p12, 1, 0 }
  0x12   : > { %s503_s28 = scalar_lea.hbm %s604_s0, %s268_s24  ;;  %s116_s29 = scalar_lea.vmem [#allocation2], %s267_s25 }
  0x13   : > { %s123_s30 = sshll.u32 %s116_s29, 4  ;;  %p507_p13 = pnand %p289_p10, %p479_p5  ;;  %s511_s30 = int_to_ptr.vmem [resolvable:$true] %s123_s30 }
  0x14   : > { %s113_s4 = scalar_lea.sflag [#allocation3], %s112_s23  ;;  %s325_s5 = scalar_lea.hbm %s503_s28, 128 }
  0x15   : > { %p326_p2 = scmp.ne.s32.totalorder %s503_s28, %s325_s5  ;;  %p327_p3 = pneg %p507_p13 }
  0x16   : > { %s330_s8 = scalar_lea.hbm %s604_s0, 256  ;;  %p331_p5 = scmp.lt.u32.totalorder %s503_s28, %s604_s0 }
  0x17   : > { %p328_p4 = pnand %p327_p3, %p326_p2  ;;  %p332_p8 = scmp.lt.u32.totalorder %s330_s8, %s325_s5 }
  0x18   : > { %p334_p9 = scmp.lt.u32.totalorder %s325_s5, %s503_s28 }
  0x19   : > { %p329_p7 = pneg %p328_p4  ;;  %p333_p10 = por %p332_p8, %p331_p5 }
  0x1b   : > { %p335_p0 = por %p334_p9, %p333_p10 }
  0x1d   : > { %p336_p1 = pnand %p335_p0, %p329_p7 }
  0x1f   : > { %339 = shalt.err (!%p336_p1)
}
  0x20   : > { %s340_s17 = scalar_lea.vmem %s511_s30, 128  ;;  %s423_s19 = smov [#allocation2]  }
  0x21   : > { %p341_p2 = scmp.ne.s32.totalorder %s511_s30, %s340_s17  ;;  %s345_s23 = sshll.u32 %s423_s19, 4  ;;  %s346_s23 = int_to_ptr.vmem [resolvable:$false] %s345_s23 }
  0x22   : > { %s347_s24 = scalar_lea.vmem %s346_s23, 256  ;;  %p348_p11 = scmp.lt.s32.totalorder %s511_s30, %s346_s23 }
  0x23   : > { %p343_p4 = pnand %p341_p2, %p327_p3  ;;  %p349_p5 = scmp.lt.s32.totalorder %s347_s24, %s340_s17 }
  0x25   : > { %p344_p12 = pneg %p343_p4  ;;  %p350_p8 = por %p349_p5, %p348_p11 }
  0x27   : > { %p351_p9 = pnand %p350_p8, %p344_p12 }
  0x29   : > { %354 = shalt.err (!%p351_p9)
}
  0x2a   : > { %284 = dma.hbm_to_vmem [thread:$0]  (!%p507_p13), %s503_s28, 128, %s511_s30, %s113_s4  }
  0x2b   : > { %p613_p0 = scmp.lt.s32.totalorder %s421_s12, 3  ;;  %p614_p1 = scmp.ge.s32.totalorder %s421_s12, 1 }
  0x2d   : > { %p129_p3 = pnand %p614_p1, %p613_p0 }
  0x2e   : > { %s545_s25 = sand.u32 (!%p129_p3), 1, %s413_s10  }
  0x2f   : > { %132 = sbr.rel (%p129_p3) target bundleno = 379 (0x17b), region = 28  ;;  %s270_s26 = sshll.u32 (!%p129_p3), %s545_s25, 3 }
  0x30   : > { %s135_s27 = scalar_lea.sflag (!%p129_p3), [#allocation3], %s545_s25  ;;  %s138_s29 = scalar_lea.vmem (!%p129_p3), [#allocation2], %s270_s26 }
  0x36   : > { %400 = dma.done.wait (%p483_p6), %s135_s27, 128  }
  0x37   : > { %402 = vsyncadd (%p483_p6), %s135_s27, 4294967168  ;;  %v159_v0 = vld [vmem:[%s138_s29] sm:$0xff]  ;;  %s274_s20 = sshll.u32 %s461_s13, 7  ;;  %s158_s3 = scalar_lea.vmem [#allocation5], %s270_s26 }
  0x38   : > { %160 = vadd.xlane.f32.xlu0 %v159_v0  ;;  %v272_v9 = vld [vmem:[%s605_s1] ss:$0 sm:$0xff]  ;;  %s194_s4 = sshll.u32 %s158_s3, 4  ;;  %s560_s7 = scalar_lea.hbm %s606_s2, %s274_s20  ;;  %s562_s4 = int_to_ptr.vmem [resolvable:$true] %s194_s4 }
  0x39   : > { %s181_s8 = scalar_lea.sflag [#allocation4], %s545_s25  ;;  %s355_s14 = scalar_lea.vmem %s562_s4, 128 }
  0x3a   : > { %p356_p6 = scmp.ne.s32.totalorder %s562_s4, %s355_s14  ;;  %p615_p11 = scmp.ne.s32.totalorder %s610_s21, 0 }
  0x3b   : > { %s424_s13 = smov [#allocation5]  }
  0x3c   : > { %p357_p12 = pnand %p356_p6, %p615_p11  ;;  %s359_s16 = sshll.u32 %s424_s13, 4  ;;  %s360_s16 = int_to_ptr.vmem [resolvable:$false] %s359_s16 }
  0x3d   : > { %s361_s17 = scalar_lea.vmem %s360_s16, 256  ;;  %p362_p7 = scmp.lt.s32.totalorder %s562_s4, %s360_s16 }
  0x3e   : > { %p358_p13 = pneg %p357_p12  ;;  %p363_p10 = scmp.lt.s32.totalorder %s361_s17, %s355_s14 }
  0x40   : > { %p364_p2 = por %p363_p10, %p362_p7 }
  0x42   : > { %p365_p4 = pnand %p364_p2, %p358_p13 }
  0xc5   : > { %v161_v1 = vpop.xlane.xlu0 %160 }
  0xc6   : > { %v162_v2 = vmul.f32 0.0078125, %v161_v1 }
  0xc8   : > { %v163_v3 = vsub.f32 %v159_v0, %v162_v2 }
  0xca   : > { %v164_v4 = vmul.f32 %v163_v3, %v163_v3 }
  0xcc   : > { %165 = vadd.xlane.f32.xlu0 %v164_v4 }
 0x159   : > { %v166_v5 = vpop.xlane.xlu0 %165 }
 0x15a   : > { %v167_v6 = vmul.f32 0.0078125, %v166_v5 }
 0x15c   : > { %v168_v7 = vadd.f32 1e-06, %v167_v6 }
 0x15e   : > { %323 = vrsqrt.f32 %v168_v7 }
 0x168   : > { %v324_v8 = vpop.eup %323 }
 0x169   : > { %v170_v10 = vmul.f32 %v324_v8, %v163_v3 }
 0x16b   : > { %v178_v11 = vmul.f32 %v272_v9, %v170_v10 }
 0x16d   : > { %179 = vst [vmem:[%s158_s3] sm:$0xff] %v178_v11 }
 0x16e   : > { %368 = shalt.err (!%p365_p4)
}
 0x16f   : > { %s369_s19 = scalar_lea.hbm %s560_s7, 128  ;;  %s373_s25 = scalar_lea.hbm %s606_s2, 256 }
 0x170   : > { %p370_p5 = scmp.ne.s32.totalorder %s560_s7, %s369_s19  ;;  %p374_p0 = scmp.lt.u32.totalorder %s560_s7, %s606_s2 }
 0x171   : > { %p375_p1 = scmp.lt.u32.totalorder %s373_s25, %s369_s19  ;;  %p377_p6 = scmp.lt.u32.totalorder %s369_s19, %s560_s7 }
 0x172   : > { %p371_p8 = pnand %p370_p5, %p615_p11 }
 0x173   : > { %p376_p3 = por %p375_p1, %p374_p0 }
 0x174   : > { %p372_p9 = pneg %p371_p8 }
 0x175   : > { %p378_p12 = por %p377_p6, %p376_p3 }
 0x177   : > { %p379_p13 = pnand %p378_p12, %p372_p9 }
 0x179   : > { %382 = shalt.err (!%p379_p13)
}
 0x17a   : > { %279 = dma.vmem_to_hbm [thread:$0]  (%p615_p11), %s562_s4, 128, %s560_s7, %s181_s8  }
 0x17b PF: > { %s206_s29 = sand.u32 1, %s409_s9   ;;  %p616_p7 = scmp.ne.s32.totalorder %s611_s22, 0 }
 0x17c   : > { %p617_p10 = scmp.ge.s32.totalorder %s421_s12, 2  ;;  %s207_s28 = scalar_lea.sflag [#allocation4], %s206_s29 }
 0x17e   : > { %p286_p2 = pnand %p617_p10, %p616_p7 }
 0x180   : > { %404 = dma.done.wait (!%p286_p2), %s207_s28, 128  }
 0x181   : > { %406 = vsyncadd (!%p286_p2), %s207_s28, 4294967168  ;;  %p15_p4 = scmp.ge.s32.totalorder %s465_s15, 4   ;;  %s618_s9 = smov %s413_s10 }
 0x182   : > { %s619_s10 = smov %s417_s11  ;;  %s620_s11 = smov %s477_s18 }
 0x183   : > { %s621_s12 = smov %s465_s15  ;;  %17 = sbr.rel (!%p15_p4) target bundleno = 5 (0x5), region = 73 }
 0x18a   :  { %212 = vsyncpa [#allocation3], 1 }
 0x18b   :  { %214 = vsyncpa [#allocation3 + $0x1], 1 }
 0x18c   :  { %215 = vsyncpa [#allocation4], 1 }
 0x18d   :  { %217 = vsyncpa [#allocation4 + $0x1], 1 }

</bundles_post_ra>
